<compile_context>
chip_gen: v5e
topology: v5e:2x2
jax: 0.10.0
libtpu: 0.0.40
codegen_flags: <defaults>
</compile_context>

<pallas_src>
import functools

import numpy as np
import jax
import jax.numpy as jnp
from jax.experimental import pallas as pl
from jax.experimental.pallas import tpu as pltpu


# ----------------------------------------------------------------------------
# Skeleton graph construction (numpy, identical to the PyTorch reference code)
# ----------------------------------------------------------------------------
def get_hop_distance(num_node, edge, max_hop=1):
    A = np.zeros((num_node, num_node))
    for i, j in edge:
        A[j, i] = 1
        A[i, j] = 1
    hop_dis = np.zeros((num_node, num_node)) + np.inf
    transfer_mat = [np.linalg.matrix_power(A, d) for d in range(max_hop + 1)]
    arrive_mat = np.stack(transfer_mat) > 0
    for d in range(max_hop, -1, -1):
        hop_dis[arrive_mat[d]] = d
    return hop_dis


def normalize_digraph(A):
    Dl = np.sum(A, 0)
    num_node = A.shape[0]
    Dn = np.zeros((num_node, num_node))
    for i in range(num_node):
        if Dl[i] > 0:
            Dn[i, i] = Dl[i] ** (-1)
    return np.dot(A, Dn)


def build_spatial_adjacency(max_hop=1, dilation=1):
    num_node = 14
    self_link = [(i, i) for i in range(num_node)]
    neighbor_link = [(0, 1), (1, 3), (0, 2), (2, 4), (0, 13), (5, 13), (6, 13),
                     (5, 7), (7, 9), (6, 8), (8, 10), (12, 13), (11, 13)]
    edge = self_link + neighbor_link
    center = 13
    hop_dis = get_hop_distance(num_node, edge, max_hop=max_hop)
    valid_hop = range(0, max_hop + 1, dilation)
    adjacency = np.zeros((num_node, num_node))
    for hop in valid_hop:
        adjacency[hop_dis == hop] = 1
    normalize_adjacency = normalize_digraph(adjacency)
    A = []
    for hop in valid_hop:
        a_root = np.zeros((num_node, num_node))
        a_close = np.zeros((num_node, num_node))
        a_further = np.zeros((num_node, num_node))
        for i in range(num_node):
            for j in range(num_node):
                if hop_dis[j, i] == hop:
                    if hop_dis[j, center] == hop_dis[i, center]:
                        a_root[j, i] = normalize_adjacency[j, i]
                    elif hop_dis[j, center] > hop_dis[i, center]:
                        a_close[j, i] = normalize_adjacency[j, i]
                    else:
                        a_further[j, i] = normalize_adjacency[j, i]
        if hop == 0:
            A.append(a_root)
        else:
            A.append(a_root + a_close)
            A.append(a_further)
    return np.stack(A)  # (3, 14, 14)


# ----------------------------------------------------------------------------
# Pallas kernel: one batch element per grid step; everything lane-dense matmuls
# ----------------------------------------------------------------------------
def gcn_block_kernel(*refs, P, FCout, identity_residual):
    if identity_residual:
        (x_ref, w1_ref, b1_ref, ewT_ref, s2_ref, t2_ref,
         wt_ref, bt_ref, o_ref) = refs
        wr_ref = br_ref = None
    else:
        (x_ref, w1_ref, b1_ref, ewT_ref, s2_ref, t2_ref,
         wt_ref, bt_ref, wr_ref, br_ref, o_ref) = refs

    xj = x_ref[0]                                           # (J, F*Cin)

    # ---- conv_block: 1x1 conv (+ folded BN1) + ReLU, all P partitions in one matmul
    y = jnp.dot(xj, w1_ref[...], preferred_element_type=jnp.float32) + b1_ref[...]
    y = jnp.maximum(y, 0.0)                                 # (J, P*F*Cout)

    # ---- spatial graph contraction: g[w, f*C+c] = sum_{p,j} ew[p,j,w] * y_p[j, f*C+c]
    # partition slices are 128-lane aligned (no data movement); 3 accumulating MXU pushes
    g = jnp.dot(ewT_ref[0], y[:, 0:FCout], preferred_element_type=jnp.float32)
    for p in range(1, P):                                   # P = 3 (static)
        g = g + jnp.dot(ewT_ref[p], y[:, p * FCout:(p + 1) * FCout],
                        preferred_element_type=jnp.float32)

    # ---- temporal_block: BN2 -> ReLU -> (3,1) conv as banded matmul (BN3 folded)
    h = jnp.maximum(g * s2_ref[...] + t2_ref[...], 0.0)     # (J, F*Cout)
    z = jnp.dot(h, wt_ref[...], preferred_element_type=jnp.float32) + bt_ref[...]

    # ---- residual branch
    if identity_residual:
        res = xj
    else:
        res = jnp.dot(xj, wr_ref[...], preferred_element_type=jnp.float32) + br_ref[...]

    o_ref[0] = (z + res).astype(o_ref.dtype)                # lane-dense (J, F*Cout) store


# ----------------------------------------------------------------------------
# Wrapper: parameter folding (glue) + pallas_call
# ----------------------------------------------------------------------------
def gcn_block_forward(x_nchw, params, *, identity_residual):
    B, Cin, F, J = x_nchw.shape
    P, _, Cout = params['w1'].shape
    FCin, FCout = F * Cin, F * Cout
    eps = 1e-5

    def fold(gamma, beta, mean, var):
        s = gamma / jnp.sqrt(var + eps)
        return s, beta - mean * s

    s1, t1 = fold(params['gamma1'], params['beta1'], params['mean1'], params['var1'])
    s2, t2 = fold(params['gamma2'], params['beta2'], params['mean2'], params['var2'])
    s3, t3 = fold(params['gamma3'], params['beta3'], params['mean3'], params['var3'])
    sr, tr = fold(params['gammar'], params['betar'], params['meanr'], params['varr'])

    # layout glue: NCHW -> (B, J, F*Cin); rows = joints, cols = frame-major/channel-minor
    x_j = jnp.transpose(x_nchw, (0, 3, 2, 1)).reshape(B, J, FCin)

    eyeF = jnp.eye(F, dtype=jnp.float32)

    # 1x1 conv weights with BN1 folded; frame-block-diagonal, all P partitions concatenated
    w1f = params['w1'] * s1[:, None, :]                              # (P, Cin, Cout)
    b1f = params['b1'] * s1 + t1                                     # (P, Cout)
    W1 = jnp.concatenate([jnp.kron(eyeF, w1f[p]) for p in range(P)], axis=1)  # (F*Cin, P*F*Cout)
    B1 = jnp.tile(b1f[:, None, :], (1, F, 1)).reshape(1, P * FCout)

    # spatial graph operator: transposed edge weights (no kron with I_F -> 2.3 KB, not 602 KB)
    ew = params['A'] * params['edge_importance']                     # (P, J, J)
    ewT = jnp.transpose(ew, (0, 2, 1))

    # BN2 scale/shift broadcast lane-dense
    S2 = jnp.tile(s2, F).reshape(1, FCout)
    T2 = jnp.tile(t2, F).reshape(1, FCout)

    # temporal (3,1) conv as banded (F*Cout, F*Cout) matrix; BN3 folded; boundaries implicit
    shifts = [jnp.eye(F, k=1 - k, dtype=jnp.float32) for k in range(3)]
    wtf = params['wt'] * s3[None, None, :]                           # (3, Cout, Cout)
    Wt = sum(jnp.kron(shifts[k], wtf[k]) for k in range(3))          # (F*Cout, F*Cout)
    Bt = jnp.tile(params['bt'] * s3 + t3, F).reshape(1, FCout)

    inputs = [x_j, W1, B1, ewT, S2, T2, Wt, Bt]

    if not identity_residual:
        wrf = params['wr'] * sr[None, None, :]                       # (3, Cin, Cout)
        Wr = sum(jnp.kron(shifts[k], wrf[k]) for k in range(3))      # (F*Cin, F*Cout)
        Br = jnp.tile(params['br'] * sr + tr, F).reshape(1, FCout)
        inputs += [Wr, Br]

    def full_spec(a):
        nd = a.ndim
        return pl.BlockSpec(a.shape, lambda b, _nd=nd: (0,) * _nd)

    in_specs = [pl.BlockSpec((1, J, FCin), lambda b: (b, 0, 0))]
    in_specs += [full_spec(a) for a in inputs[1:]]

    kernel = functools.partial(gcn_block_kernel, P=P, FCout=FCout,
                               identity_residual=identity_residual)

    out_j = pl.pallas_call(
        kernel,
        out_shape=jax.ShapeDtypeStruct((B, J, FCout), jnp.float32),
        grid=(B,),
        in_specs=in_specs,
        out_specs=pl.BlockSpec((1, J, FCout), lambda b: (b, 0, 0)),
        compiler_params=pltpu.CompilerParams(dimension_semantics=("parallel",)),
    )(*inputs)

    # back to NCHW (rows were joints, cols were (frame, channel))
    return out_j.reshape(B, J, F, Cout).transpose(0, 3, 2, 1)


# ----------------------------------------------------------------------------
# Deterministic parameter init (synthetic; shapes follow the module __init__)
# ----------------------------------------------------------------------------
def init_params(key, Cin, Cout, P, J):
    A_np = build_spatial_adjacency(max_hop=1, dilation=1)
    assert A_np.shape == (P, J, J)
    ks = jax.random.split(key, 24)

    def nrm(k, shape, scale=0.1):
        return scale * jax.random.normal(k, shape, jnp.float32)

    def uni(k, shape):
        return 0.5 + jax.random.uniform(k, shape, jnp.float32)

    return dict(
        A=jnp.asarray(A_np, jnp.float32),
        edge_importance=jnp.ones((P, J, J), jnp.float32),   # nn.Parameter(torch.ones(...))
        # conv_block: Conv2d(Cin, Cout*P, 1x1) + BatchNorm2d(Cout*P)
        w1=nrm(ks[0], (P, Cin, Cout), 0.3), b1=nrm(ks[1], (P, Cout)),
        gamma1=1.0 + nrm(ks[2], (P, Cout)), beta1=nrm(ks[3], (P, Cout)),
        mean1=nrm(ks[4], (P, Cout)), var1=uni(ks[5], (P, Cout)),
        # temporal_block: BN -> ReLU -> Conv2d(Cout, Cout, (3,1), pad (1,0)) -> BN
        gamma2=1.0 + nrm(ks[6], (Cout,)), beta2=nrm(ks[7], (Cout,)),
        mean2=nrm(ks[8], (Cout,)), var2=uni(ks[9], (Cout,)),
        wt=nrm(ks[10], (3, Cout, Cout), 0.3), bt=nrm(ks[11], (Cout,)),
        gamma3=1.0 + nrm(ks[12], (Cout,)), beta3=nrm(ks[13], (Cout,)),
        mean3=nrm(ks[14], (Cout,)), var3=uni(ks[15], (Cout,)),
        # residual: Conv2d(Cin, Cout, (3,1), pad (1,0)) + BN
        wr=nrm(ks[16], (3, Cin, Cout), 0.3), br=nrm(ks[17], (Cout,)),
        gammar=1.0 + nrm(ks[18], (Cout,)), betar=nrm(ks[19], (Cout,)),
        meanr=nrm(ks[20], (Cout,)), varr=uni(ks[21], (Cout,)),
    )


# ----------------------------------------------------------------------------
# Plain-JAX reference of the PyTorch forward (for correctness check)
# ----------------------------------------------------------------------------
def reference_forward(x, params, identity_residual):
    eps = 1e-5
    B, Cin, F, J = x.shape
    P, _, Cout = params['w1'].shape

    def fold(g, b, m, v):
        s = g / jnp.sqrt(v + eps)
        return s, b - m * s

    s1, t1 = fold(params['gamma1'], params['beta1'], params['mean1'], params['var1'])
    s2, t2 = fold(params['gamma2'], params['beta2'], params['mean2'], params['var2'])
    s3, t3 = fold(params['gamma3'], params['beta3'], params['mean3'], params['var3'])
    sr, tr = fold(params['gammar'], params['betar'], params['meanr'], params['varr'])

    y = jnp.einsum('bcfj,pco->bpofj', x, params['w1']) + params['b1'][None, :, :, None, None]
    y = jnp.maximum(y * s1[None, :, :, None, None] + t1[None, :, :, None, None], 0.0)
    ew = params['A'] * params['edge_importance']
    u = jnp.einsum('bpofj,pjw->bofw', y, ew)

    h = jnp.maximum(u * s2[None, :, None, None] + t2[None, :, None, None], 0.0)
    hp = jnp.pad(h, ((0, 0), (0, 0), (1, 1), (0, 0)))
    z = params['bt'][None, :, None, None]
    for k in range(3):
        z = z + jnp.einsum('bcfw,co->bofw', hp[:, :, k:k + F, :], params['wt'][k])
    z = z * s3[None, :, None, None] + t3[None, :, None, None]

    if identity_residual:
        res = x
    else:
        xp = jnp.pad(x, ((0, 0), (0, 0), (1, 1), (0, 0)))
        res = params['br'][None, :, None, None]
        for k in range(3):
            res = res + jnp.einsum('bcfj,co->bofj', xp[:, :, k:k + F, :], params['wr'][k])
        res = res * sr[None, :, None, None] + tr[None, :, None, None]
    return z + res


if __name__ == "__main__":
    key = jax.random.PRNGKey(0)
    F, J, P = 16, 14, 3            # J=14 fixed by the skeleton graph; F*Cout = 128 lane-dense

    # Case 1: Cin != Cout -> (3,1)-conv residual branch
    B, Cin, Cout = 2, 4, 8
    kx, kp, key = jax.random.split(key, 3)
    x = jax.random.normal(kx, (B, Cin, F, J), jnp.float32)
    params = init_params(kp, Cin, Cout, P, J)
    out = jax.block_until_ready(gcn_block_forward(x, params, identity_residual=False))
    assert out.shape == (B, Cout, F, J)
    ref = reference_forward(x, params, identity_residual=False)
    if not jnp.allclose(out, ref, rtol=5e-2, atol=5e-2):
        raise AssertionError("Pallas kernel mismatch vs reference (conv residual)")

    # Case 2: Cin == Cout -> identity residual
    B2, C2 = 2, 8
    kx2, kp2 = jax.random.split(key)
    x2 = jax.random.normal(kx2, (B2, C2, F, J), jnp.float32)
    params2 = init_params(kp2, C2, C2, P, J)
    out2 = jax.block_until_ready(gcn_block_forward(x2, params2, identity_residual=True))
    assert out2.shape == (B2, C2, F, J)
    ref2 = reference_forward(x2, params2, identity_residual=True)
    if not jnp.allclose(out2, ref2, rtol=5e-2, atol=5e-2):
        raise AssertionError("Pallas kernel mismatch vs reference (identity residual)")

    print("KERNEL_OK")
</pallas_src>

<mosaic_0001>
module attributes {stable_mosaic.version = 11 : i64} {
  func.func @gcn_block_kernel(%arg0: i32, %arg1: memref<1x14x64xf32, #tpu.memory_space<vmem>>, %arg2: memref<64x384xf32, #tpu.memory_space<vmem>>, %arg3: memref<1x384xf32, #tpu.memory_space<vmem>>, %arg4: memref<3x14x14xf32, #tpu.memory_space<vmem>>, %arg5: memref<1x128xf32, #tpu.memory_space<vmem>>, %arg6: memref<1x128xf32, #tpu.memory_space<vmem>>, %arg7: memref<128x128xf32, #tpu.memory_space<vmem>>, %arg8: memref<1x128xf32, #tpu.memory_space<vmem>>, %arg9: memref<64x128xf32, #tpu.memory_space<vmem>>, %arg10: memref<1x128xf32, #tpu.memory_space<vmem>>, %arg11: memref<1x14x128xf32, #tpu.memory_space<vmem>>) attributes {dimension_semantics = [#tpu.dimension_semantics<parallel>], iteration_bounds = array<i64: 2>, scalar_prefetch = 0 : i64, scratch_operands = 0 : i64, tpu.core_type = #tpu.core_type<tc>, window_params = [{transform_indices = @transform_0, window_bounds = array<i64: 1, 14, 64>}, {pipeline_mode = #tpu.pipeline_mode<synchronous>, transform_indices = @transform_1, window_bounds = array<i64: 64, 384>}, {pipeline_mode = #tpu.pipeline_mode<synchronous>, transform_indices = @transform_2, window_bounds = array<i64: 1, 384>}, {pipeline_mode = #tpu.pipeline_mode<synchronous>, transform_indices = @transform_3, window_bounds = array<i64: 3, 14, 14>}, {pipeline_mode = #tpu.pipeline_mode<synchronous>, transform_indices = @transform_4, window_bounds = array<i64: 1, 128>}, {pipeline_mode = #tpu.pipeline_mode<synchronous>, transform_indices = @transform_5, window_bounds = array<i64: 1, 128>}, {pipeline_mode = #tpu.pipeline_mode<synchronous>, transform_indices = @transform_6, window_bounds = array<i64: 128, 128>}, {pipeline_mode = #tpu.pipeline_mode<synchronous>, transform_indices = @transform_7, window_bounds = array<i64: 1, 128>}, {pipeline_mode = #tpu.pipeline_mode<synchronous>, transform_indices = @transform_8, window_bounds = array<i64: 64, 128>}, {pipeline_mode = #tpu.pipeline_mode<synchronous>, transform_indices = @transform_9, window_bounds = array<i64: 1, 128>}, {transform_indices = @transform_10, window_bounds = array<i64: 1, 14, 128>}]} {
    %c0 = arith.constant 0 : index
    %c0_0 = arith.constant 0 : index
    %c0_1 = arith.constant 0 : index
    %0 = vector.load %arg1[%c0, %c0_0, %c0_1] : memref<1x14x64xf32, #tpu.memory_space<vmem>>, vector<1x14x64xf32>
    %1 = vector.shape_cast %0 : vector<1x14x64xf32> to vector<14x64xf32>
    %c0_2 = arith.constant 0 : index
    %c0_3 = arith.constant 0 : index
    %2 = vector.load %arg2[%c0_2, %c0_3] : memref<64x384xf32, #tpu.memory_space<vmem>>, vector<64x384xf32>
    %cst = arith.constant dense<0.000000e+00> : vector<14x384xf32>
    %3 = tpu.matmul %1, %2, %cst {dimension_numbers = #tpu.dot_dimension_numbers<[1], [0], [0], [1], [0, 0, 1, 1], [], []>} : vector<14x64xf32>, vector<64x384xf32>, vector<14x384xf32> -> vector<14x384xf32>
    %c0_4 = arith.constant 0 : index
    %c0_5 = arith.constant 0 : index
    %4 = vector.load %arg3[%c0_4, %c0_5] : memref<1x384xf32, #tpu.memory_space<vmem>>, vector<1x384xf32>
    %5 = vector.broadcast %4 : vector<1x384xf32> to vector<14x384xf32>
    %6 = arith.addf %3, %5 : vector<14x384xf32>
    %cst_6 = arith.constant 0.000000e+00 : f32
    %7 = vector.broadcast %cst_6 : f32 to vector<14x384xf32>
    %8 = arith.maximumf %6, %7 : vector<14x384xf32>
    %c0_7 = arith.constant 0 : index
    %c0_8 = arith.constant 0 : index
    %c0_9 = arith.constant 0 : index
    %9 = vector.load %arg4[%c0_7, %c0_8, %c0_9] : memref<3x14x14xf32, #tpu.memory_space<vmem>>, vector<1x14x14xf32>
    %10 = vector.shape_cast %9 : vector<1x14x14xf32> to vector<14x14xf32>
    %11 = vector.extract_strided_slice %8 {offsets = [0, 0], sizes = [14, 128], strides = [1, 1]} : vector<14x384xf32> to vector<14x128xf32>
    %cst_10 = arith.constant dense<0.000000e+00> : vector<14x128xf32>
    %12 = tpu.matmul %10, %11, %cst_10 {dimension_numbers = #tpu.dot_dimension_numbers<[1], [0], [0], [1], [0, 0, 1, 1], [], []>} : vector<14x14xf32>, vector<14x128xf32>, vector<14x128xf32> -> vector<14x128xf32>
    %c1 = arith.constant 1 : index
    %c0_11 = arith.constant 0 : index
    %c0_12 = arith.constant 0 : index
    %13 = vector.load %arg4[%c1, %c0_11, %c0_12] : memref<3x14x14xf32, #tpu.memory_space<vmem>>, vector<1x14x14xf32>
    %14 = vector.shape_cast %13 : vector<1x14x14xf32> to vector<14x14xf32>
    %15 = vector.extract_strided_slice %8 {offsets = [0, 128], sizes = [14, 128], strides = [1, 1]} : vector<14x384xf32> to vector<14x128xf32>
    %cst_13 = arith.constant dense<0.000000e+00> : vector<14x128xf32>
    %16 = tpu.matmul %14, %15, %cst_13 {dimension_numbers = #tpu.dot_dimension_numbers<[1], [0], [0], [1], [0, 0, 1, 1], [], []>} : vector<14x14xf32>, vector<14x128xf32>, vector<14x128xf32> -> vector<14x128xf32>
    %17 = arith.addf %12, %16 : vector<14x128xf32>
    %c2 = arith.constant 2 : index
    %c0_14 = arith.constant 0 : index
    %c0_15 = arith.constant 0 : index
    %18 = vector.load %arg4[%c2, %c0_14, %c0_15] : memref<3x14x14xf32, #tpu.memory_space<vmem>>, vector<1x14x14xf32>
    %19 = vector.shape_cast %18 : vector<1x14x14xf32> to vector<14x14xf32>
    %20 = vector.extract_strided_slice %8 {offsets = [0, 256], sizes = [14, 128], strides = [1, 1]} : vector<14x384xf32> to vector<14x128xf32>
    %cst_16 = arith.constant dense<0.000000e+00> : vector<14x128xf32>
    %21 = tpu.matmul %19, %20, %cst_16 {dimension_numbers = #tpu.dot_dimension_numbers<[1], [0], [0], [1], [0, 0, 1, 1], [], []>} : vector<14x14xf32>, vector<14x128xf32>, vector<14x128xf32> -> vector<14x128xf32>
    %22 = arith.addf %17, %21 : vector<14x128xf32>
    %c0_17 = arith.constant 0 : index
    %c0_18 = arith.constant 0 : index
    %23 = vector.load %arg5[%c0_17, %c0_18] : memref<1x128xf32, #tpu.memory_space<vmem>>, vector<1x128xf32>
    %24 = vector.broadcast %23 : vector<1x128xf32> to vector<14x128xf32>
    %25 = arith.mulf %22, %24 : vector<14x128xf32>
    %c0_19 = arith.constant 0 : index
    %c0_20 = arith.constant 0 : index
    %26 = vector.load %arg6[%c0_19, %c0_20] : memref<1x128xf32, #tpu.memory_space<vmem>>, vector<1x128xf32>
    %27 = vector.broadcast %26 : vector<1x128xf32> to vector<14x128xf32>
    %28 = arith.addf %25, %27 : vector<14x128xf32>
    %cst_21 = arith.constant 0.000000e+00 : f32
    %29 = vector.broadcast %cst_21 : f32 to vector<14x128xf32>
    %30 = arith.maximumf %28, %29 : vector<14x128xf32>
    %c0_22 = arith.constant 0 : index
    %c0_23 = arith.constant 0 : index
    %31 = vector.load %arg7[%c0_22, %c0_23] : memref<128x128xf32, #tpu.memory_space<vmem>>, vector<128x128xf32>
    %cst_24 = arith.constant dense<0.000000e+00> : vector<14x128xf32>
    %32 = tpu.matmul %30, %31, %cst_24 {dimension_numbers = #tpu.dot_dimension_numbers<[1], [0], [0], [1], [0, 0, 1, 1], [], []>} : vector<14x128xf32>, vector<128x128xf32>, vector<14x128xf32> -> vector<14x128xf32>
    %c0_25 = arith.constant 0 : index
    %c0_26 = arith.constant 0 : index
    %33 = vector.load %arg8[%c0_25, %c0_26] : memref<1x128xf32, #tpu.memory_space<vmem>>, vector<1x128xf32>
    %34 = vector.broadcast %33 : vector<1x128xf32> to vector<14x128xf32>
    %35 = arith.addf %32, %34 : vector<14x128xf32>
    %c0_27 = arith.constant 0 : index
    %c0_28 = arith.constant 0 : index
    %36 = vector.load %arg9[%c0_27, %c0_28] : memref<64x128xf32, #tpu.memory_space<vmem>>, vector<64x128xf32>
    %cst_29 = arith.constant dense<0.000000e+00> : vector<14x128xf32>
    %37 = tpu.matmul %1, %36, %cst_29 {dimension_numbers = #tpu.dot_dimension_numbers<[1], [0], [0], [1], [0, 0, 1, 1], [], []>} : vector<14x64xf32>, vector<64x128xf32>, vector<14x128xf32> -> vector<14x128xf32>
    %c0_30 = arith.constant 0 : index
    %c0_31 = arith.constant 0 : index
    %38 = vector.load %arg10[%c0_30, %c0_31] : memref<1x128xf32, #tpu.memory_space<vmem>>, vector<1x128xf32>
    %39 = vector.broadcast %38 : vector<1x128xf32> to vector<14x128xf32>
    %40 = arith.addf %37, %39 : vector<14x128xf32>
    %41 = arith.addf %35, %40 : vector<14x128xf32>
    %c0_32 = arith.constant 0 : index
    %c0_33 = arith.constant 0 : index
    %c0_34 = arith.constant 0 : index
    %42 = vector.load %arg11[%c0_32, %c0_33, %c0_34] : memref<1x14x128xf32, #tpu.memory_space<vmem>>, vector<1x14x128xf32>
    %43 = vector.shape_cast %42 : vector<1x14x128xf32> to vector<14x128xf32>
    %44 = vector.shape_cast %41 : vector<14x128xf32> to vector<1x14x128xf32>
    tpu.vector_store %arg11[%c0_32, %c0_33, %c0_34], %44 {strides = array<i32>} : memref<1x14x128xf32, #tpu.memory_space<vmem>>, vector<1x14x128xf32>,
    return
  }
  func.func @transform_0(%arg0: i32) -> (i32, i32, i32) {
    %c0_i32 = arith.constant 0 : i32
    %c0_i32_0 = arith.constant 0 : i32
    %c0_i32_1 = arith.constant 0 : i32
    return %arg0, %c0_i32, %c0_i32_0 : i32, i32, i32
  }
  func.func @transform_1(%arg0: i32) -> (i32, i32) {
    %c0_i32 = arith.constant 0 : i32
    %c0_i32_0 = arith.constant 0 : i32
    %c0_i32_1 = arith.constant 0 : i32
    return %c0_i32, %c0_i32_0 : i32, i32
  }
  func.func @transform_2(%arg0: i32) -> (i32, i32) {
    %c0_i32 = arith.constant 0 : i32
    %c0_i32_0 = arith.constant 0 : i32
    %c0_i32_1 = arith.constant 0 : i32
    return %c0_i32, %c0_i32_0 : i32, i32
  }
  func.func @transform_3(%arg0: i32) -> (i32, i32, i32) {
    %c0_i32 = arith.constant 0 : i32
    %c0_i32_0 = arith.constant 0 : i32
    %c0_i32_1 = arith.constant 0 : i32
    %c0_i32_2 = arith.constant 0 : i32
    return %c0_i32, %c0_i32_0, %c0_i32_1 : i32, i32, i32
  }
  func.func @transform_4(%arg0: i32) -> (i32, i32) {
    %c0_i32 = arith.constant 0 : i32
    %c0_i32_0 = arith.constant 0 : i32
    %c0_i32_1 = arith.constant 0 : i32
    return %c0_i32, %c0_i32_0 : i32, i32
  }
  func.func @transform_5(%arg0: i32) -> (i32, i32) {
    %c0_i32 = arith.constant 0 : i32
    %c0_i32_0 = arith.constant 0 : i32
    %c0_i32_1 = arith.constant 0 : i32
    return %c0_i32, %c0_i32_0 : i32, i32
  }
  func.func @transform_6(%arg0: i32) -> (i32, i32) {
    %c0_i32 = arith.constant 0 : i32
    %c0_i32_0 = arith.constant 0 : i32
    %c0_i32_1 = arith.constant 0 : i32
    return %c0_i32, %c0_i32_0 : i32, i32
  }
  func.func @transform_7(%arg0: i32) -> (i32, i32) {
    %c0_i32 = arith.constant 0 : i32
    %c0_i32_0 = arith.constant 0 : i32
    %c0_i32_1 = arith.constant 0 : i32
    return %c0_i32, %c0_i32_0 : i32, i32
  }
  func.func @transform_8(%arg0: i32) -> (i32, i32) {
    %c0_i32 = arith.constant 0 : i32
    %c0_i32_0 = arith.constant 0 : i32
    %c0_i32_1 = arith.constant 0 : i32
    return %c0_i32, %c0_i32_0 : i32, i32
  }
  func.func @transform_9(%arg0: i32) -> (i32, i32) {
    %c0_i32 = arith.constant 0 : i32
    %c0_i32_0 = arith.constant 0 : i32
    %c0_i32_1 = arith.constant 0 : i32
    return %c0_i32, %c0_i32_0 : i32, i32
  }
  func.func @transform_10(%arg0: i32) -> (i32, i32, i32) {
    %c0_i32 = arith.constant 0 : i32
    %c0_i32_0 = arith.constant 0 : i32
    %c0_i32_1 = arith.constant 0 : i32
    return %arg0, %c0_i32, %c0_i32_0 : i32, i32, i32
  }
}

</mosaic_0001>

<bundles_post_ra>
// kernel: tpu_custom_call.1
= control target key start
LH: loop header
LB: loop body
LE: loop exit
PB: predicated region body
PF: predicated region fallthrough
CT: control target
= control target key end

     0   :  { %s1446_s0 = inlined_call_operand.vmem [shape: f32[2,14,64], index: 0, kind: input, shape index: {}]   ;;  %s1447_s1 = inlined_call_operand.hbm [shape: f32[64,384], index: 1, kind: input, shape index: {}]   ;;  %s1448_s2 = inlined_call_operand.vmem [shape: f32[1,384], index: 2, kind: input, shape index: {}]   ;;  %s1449_s3 = inlined_call_operand.hbm [shape: f32[3,14,14], index: 3, kind: input, shape index: {}]   ;;  %s1450_s4 = inlined_call_operand.hbm [shape: f32[1,128], index: 4, kind: input, shape index: {}]   ;;  %s1451_s5 = inlined_call_operand.hbm [shape: f32[1,128], index: 5, kind: input, shape index: {}]   ;;  %s1452_s6 = inlined_call_operand.hbm [shape: f32[128,128], index: 6, kind: input, shape index: {}]   ;;  %s1453_s7 = inlined_call_operand.hbm [shape: f32[1,128], index: 7, kind: input, shape index: {}]   ;;  %s1454_s8 = inlined_call_operand.vmem [shape: f32[64,128], index: 8, kind: input, shape index: {}]   ;;  %s1455_s9 = inlined_call_operand.vmem [shape: f32[1,128], index: 9, kind: input, shape index: {}]   ;;  %s1456_s10 = inlined_call_operand.vmem [shape: f32[2,14,128], index: 10, kind: output, shape index: {}]  }
   0x1   :  { %1457 = sst [smem:[#allocation16_spill]] %s1447_s1 }
   0x2   :  { %15 = vsyncpa [#allocation3], 0 }
   0x3   :  { %16 = vsyncpa [#allocation5], 0 }
   0x4   :  { %17 = vsyncpa [#allocation8], 0 }
   0x5   :  { %18 = vsyncpa [#allocation11], 0  ;;  %s1295_s13 = smov 0  }
   0x6 LB: > { %s298_s16 = sshll.u32 %s1449_s3, 4  ;;  %s1304_s17 = sadd.s32 4294967295, %s1228_s13   ;;  %s1228_s13 = sphi %s1295_s13, %s24_s13   ;;  %s299_s16 = int_to_ptr.hbm [resolvable:$true] %s298_s16 }
   0x7   : > { %p891_p0 = scmp.ge.s32.totalorder %s1228_s13, 1  ;;  %p270_p1 = scmp.lt.s32.totalorder %s1228_s13, 3 }
   0x8   : > { %p992_p2 = scmp.eq.s32.totalorder %s1304_s17, 0  ;;  %s1230_s19 = smov [#allocation4]  }
   0x9   : > { %p1309_p3 = pnand %p891_p0, %p270_p1  ;;  %s300_s20 = sshll.u32 %s1230_s19, 4  ;;  %s301_s20 = int_to_ptr.vmem [resolvable:$true] %s300_s20 }
   0xa   : > { %s325_s23 = sshll.u32 %s1451_s5, 4  ;;  %s1231_s25 = smov [#allocation7]   ;;  %s326_s23 = int_to_ptr.hbm [resolvable:$true] %s325_s23 }
   0xb   : > { %p973_p4 = pneg %p1309_p3  ;;  %s327_s26 = sshll.u32 %s1231_s25, 4  ;;  %s328_s26 = int_to_ptr.vmem [resolvable:$true] %s327_s26 }
   0xc   : > { %s1460_s1 = sld [smem:[#allocation16_spill]]  ;;  %s1232_s30 = smov 128  }
   0xd   : > { %p1320_p5 = pnand %p992_p2, %p973_p4  ;;  %s1233_s11 = smov 8  }
   0xe   : > { %s1234_s12 = smov [#allocation2]   ;;  %s1235_s15 = smov 384  }
   0xf   : > { %979 = dma.hbm_to_vmem [thread:$0]  (!%p1320_p5), %s299_s16, 768, %s301_s20, [#allocation5], %s1232_s30, %s1232_s30, %s1233_s11  }
  0x10   : > { %985 = dma.hbm_to_vmem [thread:$0]  (!%p1320_p5), %s326_s23, 16, %s328_s26, [#allocation8]  }
  0x11   : > { %s283_s14 = sshll.u32 %s1234_s12, 4  ;;  %s1236_s19 = smov 24   ;;  %s284_s14 = int_to_ptr.vmem [resolvable:$true] %s283_s14 }
  0x12   : > { %s281_s29 = sshll.u32 %s1460_s1, 4  ;;  %s313_s25 = sshll.u32 %s1450_s4, 4  ;;  %s282_s29 = int_to_ptr.hbm [resolvable:$true] %s281_s29  ;;  %s314_s25 = int_to_ptr.hbm [resolvable:$true] %s313_s25 }
  0x13   : > { %976 = dma.hbm_to_vmem [thread:$0]  (!%p1320_p5), %s282_s29, 3072, %s284_s14, [#allocation3], %s1235_s15, %s1235_s15, %s1236_s19  }
  0x14   : > { %s1237_s27 = smov [#allocation6]   ;;  %s336_s23 = sshll.u32 %s1452_s6, 4  ;;  %s337_s23 = int_to_ptr.hbm [resolvable:$true] %s336_s23 }
  0x15   : > { %s315_s28 = sshll.u32 %s1237_s27, 4  ;;  %s1238_s26 = smov [#allocation9]   ;;  %s316_s28 = int_to_ptr.vmem [resolvable:$true] %s315_s28 }
  0x16   : > { %982 = dma.hbm_to_vmem [thread:$0]  (!%p1320_p5), %s314_s25, 16, %s316_s28, [#allocation5]  }
  0x17   : > { %s338_s12 = sshll.u32 %s1238_s26, 4  ;;  %s351_s14 = sshll.u32 %s1453_s7, 4  ;;  %s339_s12 = int_to_ptr.vmem [resolvable:$true] %s338_s12  ;;  %s352_s14 = int_to_ptr.hbm [resolvable:$true] %s351_s14 }
  0x18   : > { %988 = dma.hbm_to_vmem [thread:$0]  (!%p1320_p5), %s337_s23, 2048, %s339_s12, [#allocation8], %s1232_s30, %s1232_s30, %s1233_s11  }
  0x19   : > { %s1239_s15 = smov [#allocation10]   ;;  %380 = sbr.rel (%p1309_p3) target bundleno = 489 (0x1e9), region = 60 }
  0x1a   : > { %s353_s19 = sshll.u32 %s1239_s15, 4  ;;  %s354_s19 = int_to_ptr.vmem [resolvable:$true] %s353_s19 }
  0x1b   : > { %991 = dma.hbm_to_vmem [thread:$0]  (!%p1320_p5), %s352_s14, 16, %s354_s19, [#allocation11]  }
  0x1e   : > { %1211 = dma.done.wait (%p992_p2), [#allocation3], 3072  }
  0x1f   : > { %1213 = vsyncadd (%p992_p2), [#allocation3], 4294964224 }
  0x20   : > { %1215 = dma.done.wait (%p992_p2), [#allocation5], 784  }
  0x21   : > { %1217 = vsyncadd (%p992_p2), [#allocation5], 4294966512 }
  0x22   : > { %1219 = dma.done.wait (%p992_p2), [#allocation8], 2064  }
  0x23   : > { %1221 = vsyncadd (%p992_p2), [#allocation8], 4294965232 }
  0x24   : > { %1223 = dma.done.wait (%p992_p2), [#allocation11], 16  }
  0x25   : > { %1225 = vsyncadd (%p992_p2), [#allocation11], 4294967280  ;;  %p444_p6 = scmp.lt.s32.totalorder %s1304_s17, 1  ;;  %v478_v0 = vld [vmem:[#allocation2 + $0xb0] sm:$0xff]  ;;  %v479_v1 = vld [vmem:[#allocation2 + $0xb8] sm:$0xff]  ;;  %vm488_vm0 = vcmask 523264  }
  0x26   : > { %v475_v2 = vld [vmem:[#allocation2 + $0x98] sm:$0xff]  ;;  %526 = vmatpush.msra.mxu1 %v478_v0  ;;  %549 = vmatpush.msra.mxu2 %v479_v1  ;;  %v476_v3 = vld [vmem:[#allocation2 + $0xa0] sm:$0xff]  ;;  %v477_v4 = vld [vmem:[#allocation2 + $0xa8] sm:$0xff]  ;;  %vm582_vm1 = vcmask 1045504   ;;  %vm575_vm2 = vcmask 113664  }
  0x27   : > { %503 = vmatpush.msra.mxu0 %v477_v4  ;;  %v472_v5 = vld [vmem:[#allocation2 + $0x80] sm:$0xff]  ;;  %v473_v6 = vld [vmem:[#allocation2 + $0x88] sm:$0xff]  ;;  %v474_v7 = vld [vmem:[#allocation2 + $0x90] sm:$0xff]  ;;  %s1462_s17 = smov (!%p444_p6, %s1304_s17), 1 }
  0x28   : > { %527 = vmatpush.msra.mxu1 %v475_v2  ;;  %550 = vmatpush.msra.mxu2 %v476_v3  ;;  %v471_v8 = vld [vmem:[#allocation2 + $0x78] sm:$0xff]  ;;  %v469_v9 = vld [vmem:[#allocation2 + $0x68] sm:$0xff]  ;;  %v470_v10 = vld [vmem:[#allocation2 + $0x70] sm:$0xff]  ;;  %s929_s1 = sshll.u32 %s1462_s17, 4 }
  0x29   : > { %504 = vmatpush.msra.mxu0 %v474_v7  ;;  %v468_v11 = vld [vmem:[#allocation2 + $0x60] sm:$0xff]  ;;  %v466_v12 = vld [vmem:[#allocation2 + $0x50] sm:$0xff]  ;;  %v467_v13 = vld [vmem:[#allocation2 + $0x58] sm:$0xff]  ;;  %s448_s30 = scalar_lea.vmem %s1446_s0, %s929_s1  ;;  %s453_s27 = scalar_lea.vmem %s1456_s10, %s929_s1 }
  0x2a   : > { %528 = vmatpush.msra.mxu1 %v472_v5  ;;  %551 = vmatpush.msra.mxu2 %v473_v6  ;;  %v465_v14 = vld [vmem:[#allocation2 + $0x48] sm:$0xff]  ;;  %v463_v15 = vld [vmem:[#allocation2 + $0x38] sm:$0xff]  ;;  %v464_v16 = vld [vmem:[#allocation2 + $0x40] sm:$0xff] }
  0x2b   : > { %505 = vmatpush.msra.mxu0 %v471_v8  ;;  %v460_v17 = vld [vmem:[#allocation2 + $0x20] sm:$0xff]  ;;  %v462_v18 = vld [vmem:[#allocation2 + $0x30] sm:$0xff]  ;;  %v461_v19 = vld [vmem:[#allocation2 + $0x28] sm:$0xff] }
  0x2c   : > { %529 = vmatpush.msra.mxu1 %v469_v9  ;;  %552 = vmatpush.msra.mxu2 %v470_v10  ;;  %v459_v20 = vld [vmem:[#allocation2 + $0x18] sm:$0xff]  ;;  %v457_v21 = vld [vmem:[#allocation2 + $0x8] sm:$0xff]  ;;  %v458_v22 = vld [vmem:[#allocation2 + $0x10] sm:$0xff] }
  0x2d   : > { %506 = vmatpush.msra.mxu0 %v468_v11  ;;  %v1378_v23 = vld [vmem:[%s448_s30] sm:$0xff]  ;;  %v1386_v25 = vld [vmem:[%s448_s30 + $0x8] sm:$0x3f]  ;;  %v742_v32 = vld [vmem:[%s1454_s8 + $0x38] sm:$0xff] }
  0x2e   : > { %530 = vmatpush.msra.mxu1 %v466_v12  ;;  %553 = vmatpush.msra.mxu2 %v467_v13  ;;  %v456_v24 = vld [vmem:[#allocation2] sm:$0xff]  ;;  %v707_v27 = vld [vmem:[#allocation9 + $0x78] sm:$0xff]  ;;  %v704_v33 = vld [vmem:[#allocation9 + $0x60] sm:$0xff] }
  0x2f   : > { %507 = vmatpush.msra.mxu0 %v465_v14  ;;  %v706_v28 = vld [vmem:[#allocation9 + $0x70] sm:$0xff]  ;;  %v480_v29 = vld [vmem:[%s1448_s2] sm:$0x7]  ;;  %v703_v36 = vld [vmem:[#allocation9 + $0x58] sm:$0xff] }
  0x30   : > { %531 = vmatpush.msra.mxu1 %v463_v15  ;;  %554 = vmatpush.msra.mxu2 %v464_v16  ;;  %v705_v31 = vld [vmem:[#allocation9 + $0x68] sm:$0xff]  ;;  %v483_v34 = vperm.slane %v480_v29, 1  ;;  %v702_v38 = vld [vmem:[#allocation9 + $0x50] sm:$0xff]  ;;  %v482_v40 = vperm.slane %v480_v29, 0  ;;  %v484_v43 = vperm.slane %v480_v29, 2  ;;  %v573_v51 = vld [vmem:[#allocation4 + $0x10] sm:$0xff] }
  0x31   : > { %508 = vmatpush.msra.mxu0 %v462_v18  ;;  %v574_v50 = vld [vmem:[#allocation4 + $0x18] sm:$0x3f]  ;;  %v570_v57 = vld [vmem:[#allocation4] sm:$0xff]  ;;  %v571_v59 = vld [vmem:[#allocation4 + $0x8] sm:$0x3f] }
  0x32   : > { %532 = vmatpush.msra.mxu1 %v460_v17  ;;  %555 = vmatpush.msra.mxu2 %v461_v19  ;;  %v642_v58 = vld [vmem:[#allocation4 + $0x20] sm:$0xff]  ;;  %v643_v60 = vld [vmem:[#allocation4 + $0x28] sm:$0x3f]  ;;  %v741_v62 = vld [vmem:[%s1454_s8 + $0x30] sm:$0xff] }
  0x33   : > { %509 = vmatpush.msra.mxu0 %v459_v20  ;;  %v701_v61 = vld [vmem:[#allocation9 + $0x48] sm:$0xff]  ;;  %v700_v63 = vld [vmem:[#allocation9 + $0x40] sm:$0xff]  ;;  %v740_v0 = vld [vmem:[%s1454_s8 + $0x28] sm:$0xff] }
  0x34   : > { %533 = vmatpush.msra.mxu1 %v457_v21  ;;  %556 = vmatpush.msra.mxu2 %v458_v22  ;;  %v699_v1 = vld [vmem:[#allocation9 + $0x38] sm:$0xff]  ;;  %v739_v2 = vld [vmem:[%s1454_s8 + $0x20] sm:$0xff]  ;;  %v738_v4 = vld [vmem:[%s1454_s8 + $0x18] sm:$0xff] }
  0x35   : > { %912 = vmatmul.msk.f32.vlgmr.msra.gmra.mxu1 %vm488_vm0, %v1378_v23  ;;  %914 = vmatmul.msk.f32.vlgmr.msra.gmra.mxu2 %vm488_vm0, %v1378_v23  ;;  %v698_v3 = vld [vmem:[#allocation9 + $0x30] sm:$0xff]  ;;  %v697_v5 = vld [vmem:[#allocation9 + $0x28] sm:$0xff]  ;;  %v737_v6 = vld [vmem:[%s1454_s8 + $0x10] sm:$0xff] }
  0x36   : > { %510 = vmatpush.msra.mxu0 %v456_v24  ;;  %712 = vmatpush.msrb.mxu1 %v707_v27  ;;  %v696_v7 = vld [vmem:[#allocation9 + $0x20] sm:$0xff]  ;;  %v736_v8 = vld [vmem:[%s1454_s8 + $0x8] sm:$0xff]  ;;  %v735_v10 = vld [vmem:[%s1454_s8] sm:$0xff] }
  0x37   : > { %910 = vmatmul.msk.f32.vlgmr.msra.gmra.mxu0 %vm488_vm0, %v1378_v23  ;;  %755 = vmatpush.msrb.mxu2 %v742_v32  ;;  %v695_v9 = vld [vmem:[#allocation9 + $0x18] sm:$0xff]  ;;  %v694_v11 = vld [vmem:[#allocation9 + $0x10] sm:$0xff]  ;;  %v693_v12 = vld [vmem:[#allocation9 + $0x8] sm:$0xff] }
  0x38   : > { %713 = vmatpush.msrb.mxu1 %v706_v28  ;;  %v692_v13 = vld [vmem:[#allocation9] sm:$0xff]  ;;  %v1022_v19 = vld [vmem:[#allocation6] ss:$0 sm:$0xff]  ;;  %v1023_v21 = vld [vmem:[#allocation7] ss:$0 sm:$0xff] }
  0x39   : > { %756 = vmatpush.msrb.mxu2 %v741_v62  ;;  %v1025_v32 = vld [vmem:[%s1455_s9] ss:$0 sm:$0xff] }
  0x3a   : > { %714 = vmatpush.msrb.mxu1 %v705_v31 }
  0x3b   : > { %757 = vmatpush.msrb.mxu2 %v740_v0 }
  0x3c   : > { %715 = vmatpush.msrb.mxu1 %v704_v33 }
  0x3d   : > { %913 = vmatmul.msk.f32.gmra.mxu1 %vm488_vm0, %v1386_v25  ;;  %915 = vmatmul.msk.f32.gmra.mxu2 %vm488_vm0, %v1386_v25 }
  0x3e   : > { %716 = vmatpush.msrb.mxu1 %v703_v36  ;;  %758 = vmatpush.msrb.mxu2 %v739_v2 }
  0x3f   : > { %911 = vmatmul.msk.f32.gmra.mxu0 %vm488_vm0, %v1386_v25 }
  0x40   : > { %717 = vmatpush.msrb.mxu1 %v702_v38  ;;  %759 = vmatpush.msrb.mxu2 %v738_v4 }
  0x42   : > { %718 = vmatpush.msrb.mxu1 %v701_v61  ;;  %760 = vmatpush.msrb.mxu2 %v737_v6 }
  0x44   : > { %719 = vmatpush.msrb.mxu1 %v700_v63  ;;  %761 = vmatpush.msrb.mxu2 %v736_v8 }
  0x46   : > { %720 = vmatpush.msrb.mxu1 %v699_v1  ;;  %762 = vmatpush.msrb.mxu2 %v735_v10 }
  0x47   : > { %925 = vmatmul.msk.f32.vlgmr.msrb.gmra.mxu2 %vm488_vm0, %v1378_v23 }
  0x48   : > { %721 = vmatpush.msrb.mxu1 %v698_v3 }
  0x4a   : > { %722 = vmatpush.msrb.mxu1 %v697_v5 }
  0x4c   : > { %723 = vmatpush.msrb.mxu1 %v696_v7 }
  0x4e   : > { %724 = vmatpush.msrb.mxu1 %v695_v9 }
  0x4f   : > { %926 = vmatmul.msk.f32.gmra.mxu2 %vm488_vm0, %v1386_v25 }
  0x50   : > { %725 = vmatpush.msrb.mxu1 %v694_v11 }
  0x52   : > { %726 = vmatpush.msrb.mxu1 %v693_v12 }
  0x54   : > { %727 = vmatpush.msrb.mxu1 %v692_v13 }
  0xb2   : > { %v535_v26 = vpop.f32.mrf.mxu1 }
  0xb3   : > { %v536_v39 = vadd.f32 %v535_v26, %v483_v34 }
  0xb4   : > { %v512_v30 = vpop.f32.mrf.mxu0 }
  0xb5   : > { %v565_v46 = vmax.f32 %v536_v39, 0.0  ;;  %v513_v47 = vadd.f32 %v512_v30, %v482_v40 }
  0xb7   : > { %v564_v54 = vmax.f32 %v513_v47, 0.0 }
  0xb8   : > { %v558_v35 = vpop.f32.mrf.mxu2 }
  0xb9   : > { %v559_v48 = vadd.f32 %v558_v35, %v484_v43 }
  0xba   : > { %v538_v37 = vpop.f32.mrf.mxu1 }
  0xbb   : > { %v539_v41 = vadd.f32 %v538_v37, %v483_v34  ;;  %v566_v55 = vmax.f32 %v559_v48, 0.0  ;;  %v1024_v34 = vld [vmem:[#allocation10] ss:$0 sm:$0xff] }
  0xbc   : > { %v515_v42 = vpop.f32.mrf.mxu0 }
  0xbd   : > { %v568_v44 = vmax.f32 %v539_v41, 0.0  ;;  %v516_v45 = vadd.f32 %v515_v42, %v482_v40 }
  0xbf   : > { %v567_v49 = vmax.f32 %v516_v45, 0.0  ;;  %916 = vmatpush.msk.msrb.mxu0 %vm582_vm1, %v568_v44  ;;  %931 = vmatpush.msk.msra.mxu3 %vm582_vm1, %v568_v44 }
  0xc0   : > { %v561_v52 = vpop.f32.mrf.mxu2 }
  0xc1   : > { %v562_v53 = vadd.f32 %v561_v52, %v484_v43  ;;  %601 = vmatpush.msrb.mxu0 %v565_v46  ;;  %932 = vmatpush.msra.mxu3 %v565_v46 }
  0xc2   : > { %918 = vmatmul.msk.f32.vlgmr.msra.gmra.mxu3 %vm575_vm2, %v574_v50  ;;  %917 = vmatmul.msk.f32.vlgmr.msrb.gmra.mxu0 %vm575_vm2, %v573_v51 }
  0xc3   : > { %v569_v56 = vmax.f32 %v562_v53, 0.0  ;;  %919 = vmatpush.msk.msrb.mxu3 %vm582_vm1, %v567_v49 }
  0xc5   : > { %633 = vmatpush.msrb.mxu3 %v564_v54  ;;  %922 = vmatpush.msk.msra.mxu0 %vm582_vm1, %v569_v56 }
  0xc7   : > { %933 = vmatpush.msra.mxu3 %v707_v27  ;;  %668 = vmatpush.msra.mxu0 %v566_v55 }
  0xc9   : > { %934 = vmatpush.msra.mxu3 %v706_v28 }
  0xca   : > { %920 = vmatmul.msk.f32.vlgmr.msrb.gmra.mxu3 %vm575_vm2, %v570_v57  ;;  %923 = vmatmul.msk.f32.vlgmr.msra.gmra.mxu0 %vm575_vm2, %v642_v58 }
  0xcb   : > { %935 = vmatpush.msra.mxu3 %v705_v31 }
  0xcd   : > { %936 = vmatpush.msra.mxu3 %v704_v33  ;;  %v764_v33 = vpop.f32.mrf.mxu2 }
  0xce   : > { %v765_v35 = vadd.f32 %v1025_v32, %v764_v33 }
  0xcf   : > { %937 = vmatpush.msra.mxu3 %v703_v36 }
  0xd1   : > { %938 = vmatpush.msra.mxu3 %v702_v38 }
  0xd2   : > { %921 = vmatmul.msk.f32.gmra.mxu3 %vm575_vm2, %v571_v59  ;;  %924 = vmatmul.msk.f32.gmra.mxu0 %vm575_vm2, %v643_v60 }
  0xd3   : > { %939 = vmatpush.msra.mxu3 %v701_v61 }
  0xd5   : > { %940 = vmatpush.msra.mxu3 %v700_v63  ;;  %v767_v39 = vpop.f32.mrf.mxu2 }
  0xd6   : > { %v768_v40 = vadd.f32 %v1025_v32, %v767_v39 }
  0xd7   : > { %941 = vmatpush.msra.mxu3 %v699_v1 }
  0xd9   : > { %942 = vmatpush.msra.mxu3 %v698_v3 }
  0xdb   : > { %943 = vmatpush.msra.mxu3 %v697_v5 }
  0xdd   : > { %944 = vmatpush.msra.mxu3 %v696_v7 }
  0xdf   : > { %945 = vmatpush.msra.mxu3 %v695_v9 }
  0xe1   : > { %946 = vmatpush.msra.mxu3 %v694_v11 }
  0xe3   : > { %947 = vmatpush.msra.mxu3 %v693_v12 }
  0xe5   : > { %948 = vmatpush.msra.mxu3 %v692_v13 }
 0x13f   : > { %v603_v14 = vpop.f32.mrf.mxu0 }
 0x145   : > { %v606_v15 = vpop.f32.mrf.mxu3 }
 0x147   : > { %v670_v16 = vpop.f32.mrf.mxu0 }
 0x14d   : > { %v635_v17 = vpop.f32.mrf.mxu3 }
 0x14e   : > { %v636_v18 = vadd.f32 %v635_v17, %v603_v14 }
 0x14f   : > { %v673_v26 = vpop.f32.mrf.mxu0 }
 0x150   : > { %v676_v20 = vadd.f32 %v670_v16, %v636_v18 }
 0x152   : > { %v682_v22 = vmul.f32 %v1022_v19, %v676_v20 }
 0x154   : > { %v688_v23 = vadd.f32 %v1023_v21, %v682_v22 }
 0x155   : > { %v638_v24 = vpop.f32.mrf.mxu3 }
 0x156   : > { %v639_v27 = vadd.f32 %v638_v24, %v606_v15  ;;  %v690_v28 = vmax.f32 %v688_v23, 0.0 }
 0x158   : > { %v677_v29 = vadd.f32 %v673_v26, %v639_v27  ;;  %728 = vmatmul.f32.vlgmr.msrb.gmra.mxu1 %v690_v28 }
 0x15a   : > { %v683_v30 = vmul.f32 %v1022_v19, %v677_v29 }
 0x15c   : > { %v689_v31 = vadd.f32 %v1023_v21, %v683_v30 }
 0x15e   : > { %v691_v25 = vmax.f32 %v689_v31, 0.0 }
 0x160   : > { %731 = vmatmul.f32.vlgmr.msra.gmra.mxu3 %v691_v25 }
 0x1d5   : > { %v729_v36 = vpop.f32.mrf.mxu1 }
 0x1d6   : > { %v730_v37 = vadd.f32 %v1024_v34, %v729_v36 }
 0x1d8   : > { %v770_v38 = vadd.f32 %v765_v35, %v730_v37 }
 0x1da   : > { %772 = vst [vmem:[%s453_s27] sm:$0xff] %v770_v38 }
 0x1e3   : > { %v732_v41 = vpop.f32.mrf.mxu3 }
 0x1e4   : > { %v733_v42 = vadd.f32 %v1024_v34, %v732_v41 }
 0x1e6   : > { %v771_v43 = vadd.f32 %v768_v40, %v733_v42 }
 0x1e8   : > { %773 = vst [vmem:[%s453_s27 + $0x8] sm:$0x3f] %v771_v43 }
 0x1e9 PF: > { %s24_s13 = sadd.s32 1, %s1228_s13  }
 0x1ea   : > { %p21_p7 = scmp.ge.s32.totalorder %s24_s13, 4  }
 0x1ec   :  { %23 = sbr.rel (!%p21_p7) target bundleno = 6 (0x6), region = 117 }
 0x1f1   :  { %795 = vsyncpa [#allocation3], 1 }
 0x1f2   :  { %797 = vsyncpa [#allocation3 + $0x1], 1 }
 0x1f3   :  { %798 = vsyncpa [#allocation5], 1 }
 0x1f4   :  { %799 = vsyncpa [#allocation8], 1 }
 0x1f5   :  { %800 = vsyncpa [#allocation11], 1 }

</bundles_post_ra>
